<compile_context>
chip_gen: v5e
topology: v5e:2x2
jax: 0.10.0
libtpu: 0.0.40
codegen_flags: <defaults>
</compile_context>

<pallas_src>
import functools

import jax
import jax.numpy as jnp
from jax import lax
from jax.experimental import pallas as pl
from jax.experimental.pallas import tpu as pltpu

COMPUTE_DTYPE = jnp.bfloat16   # MXU operand dtype (accumulation is f32)
_NEG_INF = -1e30               # softmax mask value for padded keys


def _vmem_budget():
    """Scoped-VMEM budget: ~5/8 of physical VMEM, capped at 96 MB.
    v5e/v6e (128 MiB) -> 80 MB, v7x (64 MiB) -> 40 MB.  Falls back to a value
    that is safe on every generation if the hardware query is unavailable."""
    try:
        cap = pltpu.get_tpu_info().vmem_capacity_bytes
    except Exception:
        cap = 64 * 1024 * 1024
    return int(min(cap * 5 // 8, 96 * 1024 * 1024))


def _row_tiling(m, candidates):
    """Return (tile, padded_extent) for a row dimension of size m.

    Picks the largest candidate tile that evenly divides m; otherwise pads m
    up to a multiple of the smallest candidate (keeps blocks (8,128)-aligned
    and the grid > 1).  Very small extents stay as one full-extent block."""
    for t in candidates:
        if m % t == 0:
            return t, m
    smallest = candidates[-1]
    if m < smallest:
        return m, m
    padded = -(-m // smallest) * smallest
    return smallest, padded


# ----------------------------- Pallas kernels -----------------------------

def _qkv_kernel(x_ref, w_ref, b_ref, q_ref, k_ref, v_ref, *, scale):
    # x_ref: (TM, C) f32   w_ref: (C, 3C) bf16   b_ref: (1, 3C) bf16
    # q/k/v_ref: (TM, C) bf16 each.
    x = x_ref[...].astype(COMPUTE_DTYPE)
    y = jnp.dot(x, w_ref[...], preferred_element_type=jnp.float32)
    y = y + b_ref[...].astype(jnp.float32)                      # (TM, 3C) f32
    c = q_ref.shape[-1]
    # Fold the 1/sqrt(head_dim) scale into q here (TM*C multiplies) instead of
    # scaling the (TQ, N) logits per head inside the attention kernel.
    q_ref[...] = (y[:, :c] * scale).astype(q_ref.dtype)
    k_ref[...] = y[:, c:2 * c].astype(k_ref.dtype)
    v_ref[...] = y[:, 2 * c:].astype(v_ref.dtype)


def _mha_proj_kernel(q_ref, k_ref, v_ref, pw_ref, pb_ref, o_ref, cat_ref, *,
                     num_heads, n_valid):
    # q_ref: (1, TQ, C) bf16 (q already scaled)   k_ref/v_ref: (1, Npad, C) bf16
    # pw_ref: (C, C) bf16   pb_ref: (1, C) bf16   o_ref: (1, TQ, C) f32
    # cat_ref: (TQ, C) bf16 VMEM scratch holding the head-concat slab.
    q = q_ref[0]
    k = k_ref[0]
    v = v_ref[0]
    c = q.shape[-1]
    hd = c // num_heads
    n_pad = k.shape[0]
    needs_mask = n_pad != n_valid
    if needs_mask:  # static (trace-time) — only emitted when padding exists
        key_valid = lax.broadcasted_iota(jnp.int32, (1, n_pad), 1) < n_valid

    for h in range(num_heads):              # static unroll over heads
        sl = slice(h * hd, (h + 1) * hd)
        # logits = q_h @ k_h^T (scale already folded into q); f32 accumulation.
        logits = lax.dot_general(
            q[:, sl], k[:, sl], (((1,), (1,)), ((), ())),
            preferred_element_type=jnp.float32)                 # (TQ, Npad) f32
        if needs_mask:
            logits = jnp.where(key_valid, logits, _NEG_INF)

        # Row-wise softmax in f32; reciprocal-multiply instead of divide (EUP).
        m = jnp.max(logits, axis=-1, keepdims=True)
        e = jnp.exp(logits - m)
        p = e * pl.reciprocal(jnp.sum(e, axis=-1, keepdims=True), approx=True)

        # Store this head's (TQ, hd) result directly into its channel slice of
        # the scratch slab — no list of live head outputs, no concatenate.
        cat_ref[:, sl] = jnp.dot(
            p.astype(v.dtype), v[:, sl],
            preferred_element_type=jnp.float32).astype(cat_ref.dtype)

    # Fused output projection: one C-wide bf16 MXU matmul per q-tile.
    o_ref[0] = (jnp.dot(cat_ref[...], pw_ref[...],
                        preferred_element_type=jnp.float32)
                + pb_ref[...].astype(jnp.float32)).astype(o_ref.dtype)


# ------------------------------- wrappers ----------------------------------

def qkv_projection(x2d, w_bf16, b_bf16, scale, vmem_limit):
    """Fused QKV projection, tiled over token rows; returns bf16 q, k, v."""
    m, c = x2d.shape
    tm, m_pad = _row_tiling(m, (512, 256, 128))
    if m_pad != m:
        x2d = jnp.pad(x2d, ((0, m_pad - m), (0, 0)))
    out_spec = pl.BlockSpec((tm, c), lambda i: (i, 0))
    q, k, v = pl.pallas_call(
        functools.partial(_qkv_kernel, scale=scale),
        out_shape=(jax.ShapeDtypeStruct((m_pad, c), COMPUTE_DTYPE),) * 3,
        grid=(m_pad // tm,),
        in_specs=[
            pl.BlockSpec((tm, c), lambda i: (i, 0)),
            pl.BlockSpec((c, 3 * c), lambda i: (0, 0)),   # resident bf16 weight
            pl.BlockSpec((1, 3 * c), lambda i: (0, 0)),
        ],
        out_specs=(out_spec, out_spec, out_spec),
        compiler_params=pltpu.CompilerParams(
            dimension_semantics=("parallel",),
            vmem_limit_bytes=vmem_limit),
    )(x2d, w_bf16, b_bf16)
    if m_pad != m:
        q, k, v = q[:m], k[:m], v[:m]
    return q, k, v


def fused_attention_projection(q, k, v, pw_bf16, pb_bf16, num_heads, n_valid,
                               tq, vmem_limit):
    """Row-tiled MHA with the output projection fused in.

    grid = (batch, q-tile); K/V and the proj weight are resident across the
    q-tile axis.  Heads are looped inside the kernel (no HBM head relayout)."""
    b, n_pad, c = q.shape
    kernel = functools.partial(_mha_proj_kernel, num_heads=num_heads,
                               n_valid=n_valid)
    return pl.pallas_call(
        kernel,
        out_shape=jax.ShapeDtypeStruct((b, n_pad, c), jnp.float32),
        grid=(b, n_pad // tq),
        in_specs=[
            pl.BlockSpec((1, tq, c), lambda i, j: (i, j, 0)),
            pl.BlockSpec((1, n_pad, c), lambda i, j: (i, 0, 0)),  # resident / batch
            pl.BlockSpec((1, n_pad, c), lambda i, j: (i, 0, 0)),  # resident / batch
            pl.BlockSpec((c, c), lambda i, j: (0, 0)),            # resident proj W
            pl.BlockSpec((1, c), lambda i, j: (0, 0)),
        ],
        out_specs=pl.BlockSpec((1, tq, c), lambda i, j: (i, j, 0)),
        scratch_shapes=[pltpu.VMEM((tq, c), COMPUTE_DTYPE)],
        compiler_params=pltpu.CompilerParams(
            dimension_semantics=("parallel", "parallel"),
            vmem_limit_bytes=vmem_limit),
    )(q, k, v, pw_bf16, pb_bf16)


# ------------------------------ forward pass --------------------------------

def attention_forward(params, x, num_heads):
    b, n, c = x.shape
    assert c % num_heads == 0
    hd = c // num_heads
    scale = hd ** (-0.5)
    vmem = _vmem_budget()

    # Pad the sequence so q-tiles stay (8,128)-aligned at real ViT lengths
    # (e.g. N=197 -> 256); padded keys are masked inside the kernel and padded
    # query rows are sliced off below.
    tq, n_pad = _row_tiling(n, (256, 128))
    if n_pad != n:
        x = jnp.pad(x, ((0, 0), (0, n_pad - n), (0, 0)))

    # One-time wrapper-side bf16 casts of the parameters: halves weight DMA /
    # resident VMEM and keeps every matmul on the native bf16 MXU path.
    qkv_w = params['qkv_w'].astype(COMPUTE_DTYPE)
    qkv_b = params['qkv_b'].astype(COMPUTE_DTYPE).reshape(1, 3 * c)
    proj_w = params['proj_w'].astype(COMPUTE_DTYPE)
    proj_b = params['proj_b'].astype(COMPUTE_DTYPE).reshape(1, c)

    x2d = x.reshape(b * n_pad, c)
    q, k, v = qkv_projection(x2d, qkv_w, qkv_b, scale, vmem)
    q = q.reshape(b, n_pad, c)
    k = k.reshape(b, n_pad, c)
    v = v.reshape(b, n_pad, c)

    # attn_drop / proj_drop: ratios are 0.0 in the module defaults -> identity.
    out = fused_attention_projection(q, k, v, proj_w, proj_b, num_heads, n, tq,
                                     vmem)
    if n_pad != n:
        out = out[:, :n, :]
    return out


def attention_reference(params, x, num_heads):
    """Pure-JAX reference matching the PyTorch module semantics."""
    b, n, c = x.shape
    hd = c // num_heads
    scale = hd ** (-0.5)
    qkv = x @ params['qkv_w'] + params['qkv_b']                  # (b, n, 3c)
    qkv = qkv.reshape(b, n, 3, num_heads, hd).transpose(2, 0, 3, 1, 4)
    q, k, v = qkv[0], qkv[1], qkv[2]                             # (b, h, n, hd)
    attn = jax.nn.softmax((q @ jnp.swapaxes(k, -2, -1)) * scale, axis=-1)
    y = (attn @ v).transpose(0, 2, 1, 3).reshape(b, n, c)
    return y @ params['proj_w'] + params['proj_b']


# ---------------------------------- main ------------------------------------

if __name__ == "__main__":
    key = jax.random.PRNGKey(0)
    kx, kqw, kpw, kpb = jax.random.split(key, 4)

    B, N, C, H = 2, 16, 32, 4            # batch=2, seq=16, hidden=32, heads=4
    x = jax.random.normal(kx, (B, N, C), dtype=jnp.float32)

    # Weights stored as (in, out) == transpose of torch's nn.Linear weight.
    params = dict(
        qkv_w=jax.random.normal(kqw, (C, 3 * C), jnp.float32) * 0.05,
        qkv_b=jnp.zeros((3 * C,), jnp.float32),      # qkv_bias=False (default)
        proj_w=jax.random.normal(kpw, (C, C), jnp.float32) * 0.05,
        proj_b=jax.random.normal(kpb, (C,), jnp.float32) * 0.05,
    )

    fwd = jax.jit(functools.partial(attention_forward, num_heads=H))
    out = fwd(params, x)
    jax.block_until_ready(out)

    ref = attention_reference(params, x, H)
    assert out.shape == (B, N, C), out.shape
    assert bool(jnp.all(jnp.isfinite(out)))
    max_err = float(jnp.max(jnp.abs(out - ref)))
    assert max_err < 5e-2, max_err
    print("KERNEL_OK")
</pallas_src>

<mosaic_0001>
module attributes {stable_mosaic.version = 11 : i64} {
  func.func @_qkv_kernel(%arg0: i32, %arg1: memref<32x32xf32, #tpu.memory_space<vmem>>, %arg2: memref<32x96xbf16, #tpu.memory_space<vmem>>, %arg3: memref<1x96xbf16, #tpu.memory_space<vmem>>, %arg4: memref<32x32xbf16, #tpu.memory_space<vmem>>, %arg5: memref<32x32xbf16, #tpu.memory_space<vmem>>, %arg6: memref<32x32xbf16, #tpu.memory_space<vmem>>) attributes {dimension_semantics = [#tpu.dimension_semantics<parallel>], iteration_bounds = array<i64: 1>, scalar_prefetch = 0 : i64, scratch_operands = 0 : i64, tpu.core_type = #tpu.core_type<tc>, window_params = [{transform_indices = @transform_0, window_bounds = array<i64: 32, 32>}, {pipeline_mode = #tpu.pipeline_mode<synchronous>, transform_indices = @transform_1, window_bounds = array<i64: 32, 96>}, {pipeline_mode = #tpu.pipeline_mode<synchronous>, transform_indices = @transform_2, window_bounds = array<i64: 1, 96>}, {transform_indices = @transform_3, window_bounds = array<i64: 32, 32>}, {transform_indices = @transform_4, window_bounds = array<i64: 32, 32>}, {transform_indices = @transform_5, window_bounds = array<i64: 32, 32>}]} {
    %c0 = arith.constant 0 : index
    %c0_0 = arith.constant 0 : index
    %0 = vector.load %arg1[%c0, %c0_0] : memref<32x32xf32, #tpu.memory_space<vmem>>, vector<32x32xf32>
    %1 = arith.truncf %0 : vector<32x32xf32> to vector<32x32xbf16>
    %c0_1 = arith.constant 0 : index
    %c0_2 = arith.constant 0 : index
    %2 = vector.load %arg2[%c0_1, %c0_2] : memref<32x96xbf16, #tpu.memory_space<vmem>>, vector<32x96xbf16>
    %cst = arith.constant dense<0.000000e+00> : vector<32x96xf32>
    %3 = tpu.matmul %1, %2, %cst {dimension_numbers = #tpu.dot_dimension_numbers<[1], [0], [0], [1], [0, 0, 1, 1], [], []>} : vector<32x32xbf16>, vector<32x96xbf16>, vector<32x96xf32> -> vector<32x96xf32>
    %c0_3 = arith.constant 0 : index
    %c0_4 = arith.constant 0 : index
    %4 = vector.load %arg3[%c0_3, %c0_4] : memref<1x96xbf16, #tpu.memory_space<vmem>>, vector<1x96xbf16>
    %5 = arith.extf %4 : vector<1x96xbf16> to vector<1x96xf32>
    %6 = vector.broadcast %5 : vector<1x96xf32> to vector<32x96xf32>
    %7 = arith.addf %3, %6 : vector<32x96xf32>
    %8 = vector.extract_strided_slice %7 {offsets = [0, 0], sizes = [32, 32], strides = [1, 1]} : vector<32x96xf32> to vector<32x32xf32>
    %cst_5 = arith.constant 0.353553385 : f32
    %9 = vector.broadcast %cst_5 : f32 to vector<32x32xf32>
    %10 = arith.mulf %8, %9 : vector<32x32xf32>
    %11 = arith.truncf %10 : vector<32x32xf32> to vector<32x32xbf16>
    %c0_6 = arith.constant 0 : index
    %c0_7 = arith.constant 0 : index
    %12 = vector.load %arg4[%c0_6, %c0_7] : memref<32x32xbf16, #tpu.memory_space<vmem>>, vector<32x32xbf16>
    tpu.vector_store %arg4[%c0_6, %c0_7], %11 {strides = array<i32>} : memref<32x32xbf16, #tpu.memory_space<vmem>>, vector<32x32xbf16>,
    %13 = vector.extract_strided_slice %7 {offsets = [0, 32], sizes = [32, 32], strides = [1, 1]} : vector<32x96xf32> to vector<32x32xf32>
    %14 = arith.truncf %13 : vector<32x32xf32> to vector<32x32xbf16>
    %c0_8 = arith.constant 0 : index
    %c0_9 = arith.constant 0 : index
    %15 = vector.load %arg5[%c0_8, %c0_9] : memref<32x32xbf16, #tpu.memory_space<vmem>>, vector<32x32xbf16>
    tpu.vector_store %arg5[%c0_8, %c0_9], %14 {strides = array<i32>} : memref<32x32xbf16, #tpu.memory_space<vmem>>, vector<32x32xbf16>,
    %16 = vector.extract_strided_slice %7 {offsets = [0, 64], sizes = [32, 32], strides = [1, 1]} : vector<32x96xf32> to vector<32x32xf32>
    %17 = arith.truncf %16 : vector<32x32xf32> to vector<32x32xbf16>
    %c0_10 = arith.constant 0 : index
    %c0_11 = arith.constant 0 : index
    %18 = vector.load %arg6[%c0_10, %c0_11] : memref<32x32xbf16, #tpu.memory_space<vmem>>, vector<32x32xbf16>
    tpu.vector_store %arg6[%c0_10, %c0_11], %17 {strides = array<i32>} : memref<32x32xbf16, #tpu.memory_space<vmem>>, vector<32x32xbf16>,
    return
  }
  func.func @transform_0(%arg0: i32) -> (i32, i32) {
    %c0_i32 = arith.constant 0 : i32
    %c0_i32_0 = arith.constant 0 : i32
    return %arg0, %c0_i32 : i32, i32
  }
  func.func @transform_1(%arg0: i32) -> (i32, i32) {
    %c0_i32 = arith.constant 0 : i32
    %c0_i32_0 = arith.constant 0 : i32
    %c0_i32_1 = arith.constant 0 : i32
    return %c0_i32, %c0_i32_0 : i32, i32
  }
  func.func @transform_2(%arg0: i32) -> (i32, i32) {
    %c0_i32 = arith.constant 0 : i32
    %c0_i32_0 = arith.constant 0 : i32
    %c0_i32_1 = arith.constant 0 : i32
    return %c0_i32, %c0_i32_0 : i32, i32
  }
  func.func @transform_3(%arg0: i32) -> (i32, i32) {
    %c0_i32 = arith.constant 0 : i32
    %c0_i32_0 = arith.constant 0 : i32
    return %arg0, %c0_i32 : i32, i32
  }
  func.func @transform_4(%arg0: i32) -> (i32, i32) {
    %c0_i32 = arith.constant 0 : i32
    %c0_i32_0 = arith.constant 0 : i32
    return %arg0, %c0_i32 : i32, i32
  }
  func.func @transform_5(%arg0: i32) -> (i32, i32) {
    %c0_i32 = arith.constant 0 : i32
    %c0_i32_0 = arith.constant 0 : i32
    return %arg0, %c0_i32 : i32, i32
  }
}

module attributes {stable_mosaic.version = 11 : i64} {
  func.func @_mha_proj_kernel(%arg0: i32, %arg1: i32, %arg2: memref<1x16x32xbf16, #tpu.memory_space<vmem>>, %arg3: memref<1x16x32xbf16, #tpu.memory_space<vmem>>, %arg4: memref<1x16x32xbf16, #tpu.memory_space<vmem>>, %arg5: memref<32x32xbf16, #tpu.memory_space<vmem>>, %arg6: memref<1x32xbf16, #tpu.memory_space<vmem>>, %arg7: memref<1x16x32xf32, #tpu.memory_space<vmem>>, %arg8: memref<16x32xbf16, #tpu.memory_space<vmem>>) attributes {dimension_semantics = [#tpu.dimension_semantics<parallel>, #tpu.dimension_semantics<parallel>], iteration_bounds = array<i64: 2, 1>, scalar_prefetch = 0 : i64, scratch_operands = 1 : i64, tpu.core_type = #tpu.core_type<tc>, window_params = [{transform_indices = @transform_0, window_bounds = array<i64: 1, 16, 32>}, {transform_indices = @transform_1, window_bounds = array<i64: 1, 16, 32>}, {transform_indices = @transform_2, window_bounds = array<i64: 1, 16, 32>}, {pipeline_mode = #tpu.pipeline_mode<synchronous>, transform_indices = @transform_3, window_bounds = array<i64: 32, 32>}, {pipeline_mode = #tpu.pipeline_mode<synchronous>, transform_indices = @transform_4, window_bounds = array<i64: 1, 32>}, {transform_indices = @transform_5, window_bounds = array<i64: 1, 16, 32>}]} {
    %c0 = arith.constant 0 : index
    %c0_0 = arith.constant 0 : index
    %c0_1 = arith.constant 0 : index
    %0 = vector.load %arg2[%c0, %c0_0, %c0_1] : memref<1x16x32xbf16, #tpu.memory_space<vmem>>, vector<1x16x32xbf16>
    %1 = vector.shape_cast %0 : vector<1x16x32xbf16> to vector<16x32xbf16>
    %c0_2 = arith.constant 0 : index
    %c0_3 = arith.constant 0 : index
    %c0_4 = arith.constant 0 : index
    %2 = vector.load %arg3[%c0_2, %c0_3, %c0_4] : memref<1x16x32xbf16, #tpu.memory_space<vmem>>, vector<1x16x32xbf16>
    %3 = vector.shape_cast %2 : vector<1x16x32xbf16> to vector<16x32xbf16>
    %c0_5 = arith.constant 0 : index
    %c0_6 = arith.constant 0 : index
    %c0_7 = arith.constant 0 : index
    %4 = vector.load %arg4[%c0_5, %c0_6, %c0_7] : memref<1x16x32xbf16, #tpu.memory_space<vmem>>, vector<1x16x32xbf16>
    %5 = vector.shape_cast %4 : vector<1x16x32xbf16> to vector<16x32xbf16>
    %6 = vector.extract_strided_slice %1 {offsets = [0, 0], sizes = [16, 8], strides = [1, 1]} : vector<16x32xbf16> to vector<16x8xbf16>
    %7 = vector.extract_strided_slice %3 {offsets = [0, 0], sizes = [16, 8], strides = [1, 1]} : vector<16x32xbf16> to vector<16x8xbf16>
    %cst = arith.constant dense<0.000000e+00> : vector<16x16xf32>
    %8 = tpu.matmul %6, %7, %cst {dimension_numbers = #tpu.dot_dimension_numbers<[1], [1], [0], [0], [0, 0, 1, 0], [], []>} : vector<16x8xbf16>, vector<16x8xbf16>, vector<16x16xf32> -> vector<16x16xf32>
    %cst_8 = arith.constant dense<0xFF800000> : vector<16xf32>
    %9 = vector.multi_reduction <maximumf>, %8, %cst_8 [1] : vector<16x16xf32> to vector<16xf32>
    %10 = vector.shape_cast %9 : vector<16xf32> to vector<16x1xf32>
    %11 = vector.broadcast %10 : vector<16x1xf32> to vector<16x16xf32>
    %12 = arith.subf %8, %11 : vector<16x16xf32>
    %13 = math.exp %12 : vector<16x16xf32>
    %cst_9 = arith.constant dense<0.000000e+00> : vector<16xf32>
    %14 = vector.multi_reduction <add>, %13, %cst_9 [1] : vector<16x16xf32> to vector<16xf32>
    %15 = vector.shape_cast %14 : vector<16xf32> to vector<16x1xf32>
    %16 = tpu.reciprocal %15 {approx = true} : vector<16x1xf32> -> vector<16x1xf32>
    %17 = vector.broadcast %16 : vector<16x1xf32> to vector<16x16xf32>
    %18 = arith.mulf %13, %17 : vector<16x16xf32>
    %19 = arith.truncf %18 : vector<16x16xf32> to vector<16x16xbf16>
    %20 = vector.extract_strided_slice %5 {offsets = [0, 0], sizes = [16, 8], strides = [1, 1]} : vector<16x32xbf16> to vector<16x8xbf16>
    %cst_10 = arith.constant dense<0.000000e+00> : vector<16x8xf32>
    %21 = tpu.matmul %19, %20, %cst_10 {dimension_numbers = #tpu.dot_dimension_numbers<[1], [0], [0], [1], [0, 0, 1, 1], [], []>} : vector<16x16xbf16>, vector<16x8xbf16>, vector<16x8xf32> -> vector<16x8xf32>
    %22 = arith.truncf %21 : vector<16x8xf32> to vector<16x8xbf16>
    %c0_11 = arith.constant 0 : index
    %c0_12 = arith.constant 0 : index
    %23 = vector.load %arg8[%c0_11, %c0_12] : memref<16x32xbf16, #tpu.memory_space<vmem>>, vector<16x8xbf16>
    tpu.vector_store %arg8[%c0_11, %c0_12], %22 {strides = array<i32>} : memref<16x32xbf16, #tpu.memory_space<vmem>>, vector<16x8xbf16>,
    %24 = vector.extract_strided_slice %1 {offsets = [0, 8], sizes = [16, 8], strides = [1, 1]} : vector<16x32xbf16> to vector<16x8xbf16>
    %25 = vector.extract_strided_slice %3 {offsets = [0, 8], sizes = [16, 8], strides = [1, 1]} : vector<16x32xbf16> to vector<16x8xbf16>
    %cst_13 = arith.constant dense<0.000000e+00> : vector<16x16xf32>
    %26 = tpu.matmul %24, %25, %cst_13 {dimension_numbers = #tpu.dot_dimension_numbers<[1], [1], [0], [0], [0, 0, 1, 0], [], []>} : vector<16x8xbf16>, vector<16x8xbf16>, vector<16x16xf32> -> vector<16x16xf32>
    %cst_14 = arith.constant dense<0xFF800000> : vector<16xf32>
    %27 = vector.multi_reduction <maximumf>, %26, %cst_14 [1] : vector<16x16xf32> to vector<16xf32>
    %28 = vector.shape_cast %27 : vector<16xf32> to vector<16x1xf32>
    %29 = vector.broadcast %28 : vector<16x1xf32> to vector<16x16xf32>
    %30 = arith.subf %26, %29 : vector<16x16xf32>
    %31 = math.exp %30 : vector<16x16xf32>
    %cst_15 = arith.constant dense<0.000000e+00> : vector<16xf32>
    %32 = vector.multi_reduction <add>, %31, %cst_15 [1] : vector<16x16xf32> to vector<16xf32>
    %33 = vector.shape_cast %32 : vector<16xf32> to vector<16x1xf32>
    %34 = tpu.reciprocal %33 {approx = true} : vector<16x1xf32> -> vector<16x1xf32>
    %35 = vector.broadcast %34 : vector<16x1xf32> to vector<16x16xf32>
    %36 = arith.mulf %31, %35 : vector<16x16xf32>
    %37 = arith.truncf %36 : vector<16x16xf32> to vector<16x16xbf16>
    %38 = vector.extract_strided_slice %5 {offsets = [0, 8], sizes = [16, 8], strides = [1, 1]} : vector<16x32xbf16> to vector<16x8xbf16>
    %cst_16 = arith.constant dense<0.000000e+00> : vector<16x8xf32>
    %39 = tpu.matmul %37, %38, %cst_16 {dimension_numbers = #tpu.dot_dimension_numbers<[1], [0], [0], [1], [0, 0, 1, 1], [], []>} : vector<16x16xbf16>, vector<16x8xbf16>, vector<16x8xf32> -> vector<16x8xf32>
    %40 = arith.truncf %39 : vector<16x8xf32> to vector<16x8xbf16>
    %c0_17 = arith.constant 0 : index
    %c8 = arith.constant 8 : index
    %41 = vector.load %arg8[%c0_17, %c8] : memref<16x32xbf16, #tpu.memory_space<vmem>>, vector<16x8xbf16>
    tpu.vector_store %arg8[%c0_17, %c8], %40 {strides = array<i32>} : memref<16x32xbf16, #tpu.memory_space<vmem>>, vector<16x8xbf16>,
    %42 = vector.extract_strided_slice %1 {offsets = [0, 16], sizes = [16, 8], strides = [1, 1]} : vector<16x32xbf16> to vector<16x8xbf16>
    %43 = vector.extract_strided_slice %3 {offsets = [0, 16], sizes = [16, 8], strides = [1, 1]} : vector<16x32xbf16> to vector<16x8xbf16>
    %cst_18 = arith.constant dense<0.000000e+00> : vector<16x16xf32>
    %44 = tpu.matmul %42, %43, %cst_18 {dimension_numbers = #tpu.dot_dimension_numbers<[1], [1], [0], [0], [0, 0, 1, 0], [], []>} : vector<16x8xbf16>, vector<16x8xbf16>, vector<16x16xf32> -> vector<16x16xf32>
    %cst_19 = arith.constant dense<0xFF800000> : vector<16xf32>
    %45 = vector.multi_reduction <maximumf>, %44, %cst_19 [1] : vector<16x16xf32> to vector<16xf32>
    %46 = vector.shape_cast %45 : vector<16xf32> to vector<16x1xf32>
    %47 = vector.broadcast %46 : vector<16x1xf32> to vector<16x16xf32>
    %48 = arith.subf %44, %47 : vector<16x16xf32>
    %49 = math.exp %48 : vector<16x16xf32>
    %cst_20 = arith.constant dense<0.000000e+00> : vector<16xf32>
    %50 = vector.multi_reduction <add>, %49, %cst_20 [1] : vector<16x16xf32> to vector<16xf32>
    %51 = vector.shape_cast %50 : vector<16xf32> to vector<16x1xf32>
    %52 = tpu.reciprocal %51 {approx = true} : vector<16x1xf32> -> vector<16x1xf32>
    %53 = vector.broadcast %52 : vector<16x1xf32> to vector<16x16xf32>
    %54 = arith.mulf %49, %53 : vector<16x16xf32>
    %55 = arith.truncf %54 : vector<16x16xf32> to vector<16x16xbf16>
    %56 = vector.extract_strided_slice %5 {offsets = [0, 16], sizes = [16, 8], strides = [1, 1]} : vector<16x32xbf16> to vector<16x8xbf16>
    %cst_21 = arith.constant dense<0.000000e+00> : vector<16x8xf32>
    %57 = tpu.matmul %55, %56, %cst_21 {dimension_numbers = #tpu.dot_dimension_numbers<[1], [0], [0], [1], [0, 0, 1, 1], [], []>} : vector<16x16xbf16>, vector<16x8xbf16>, vector<16x8xf32> -> vector<16x8xf32>
    %58 = arith.truncf %57 : vector<16x8xf32> to vector<16x8xbf16>
    %c0_22 = arith.constant 0 : index
    %c16 = arith.constant 16 : index
    %59 = vector.load %arg8[%c0_22, %c16] : memref<16x32xbf16, #tpu.memory_space<vmem>>, vector<16x8xbf16>
    tpu.vector_store %arg8[%c0_22, %c16], %58 {strides = array<i32>} : memref<16x32xbf16, #tpu.memory_space<vmem>>, vector<16x8xbf16>,
    %60 = vector.extract_strided_slice %1 {offsets = [0, 24], sizes = [16, 8], strides = [1, 1]} : vector<16x32xbf16> to vector<16x8xbf16>
    %61 = vector.extract_strided_slice %3 {offsets = [0, 24], sizes = [16, 8], strides = [1, 1]} : vector<16x32xbf16> to vector<16x8xbf16>
    %cst_23 = arith.constant dense<0.000000e+00> : vector<16x16xf32>
    %62 = tpu.matmul %60, %61, %cst_23 {dimension_numbers = #tpu.dot_dimension_numbers<[1], [1], [0], [0], [0, 0, 1, 0], [], []>} : vector<16x8xbf16>, vector<16x8xbf16>, vector<16x16xf32> -> vector<16x16xf32>
    %cst_24 = arith.constant dense<0xFF800000> : vector<16xf32>
    %63 = vector.multi_reduction <maximumf>, %62, %cst_24 [1] : vector<16x16xf32> to vector<16xf32>
    %64 = vector.shape_cast %63 : vector<16xf32> to vector<16x1xf32>
    %65 = vector.broadcast %64 : vector<16x1xf32> to vector<16x16xf32>
    %66 = arith.subf %62, %65 : vector<16x16xf32>
    %67 = math.exp %66 : vector<16x16xf32>
    %cst_25 = arith.constant dense<0.000000e+00> : vector<16xf32>
    %68 = vector.multi_reduction <add>, %67, %cst_25 [1] : vector<16x16xf32> to vector<16xf32>
    %69 = vector.shape_cast %68 : vector<16xf32> to vector<16x1xf32>
    %70 = tpu.reciprocal %69 {approx = true} : vector<16x1xf32> -> vector<16x1xf32>
    %71 = vector.broadcast %70 : vector<16x1xf32> to vector<16x16xf32>
    %72 = arith.mulf %67, %71 : vector<16x16xf32>
    %73 = arith.truncf %72 : vector<16x16xf32> to vector<16x16xbf16>
    %74 = vector.extract_strided_slice %5 {offsets = [0, 24], sizes = [16, 8], strides = [1, 1]} : vector<16x32xbf16> to vector<16x8xbf16>
    %cst_26 = arith.constant dense<0.000000e+00> : vector<16x8xf32>
    %75 = tpu.matmul %73, %74, %cst_26 {dimension_numbers = #tpu.dot_dimension_numbers<[1], [0], [0], [1], [0, 0, 1, 1], [], []>} : vector<16x16xbf16>, vector<16x8xbf16>, vector<16x8xf32> -> vector<16x8xf32>
    %76 = arith.truncf %75 : vector<16x8xf32> to vector<16x8xbf16>
    %c0_27 = arith.constant 0 : index
    %c24 = arith.constant 24 : index
    %77 = vector.load %arg8[%c0_27, %c24] : memref<16x32xbf16, #tpu.memory_space<vmem>>, vector<16x8xbf16>
    tpu.vector_store %arg8[%c0_27, %c24], %76 {strides = array<i32>} : memref<16x32xbf16, #tpu.memory_space<vmem>>, vector<16x8xbf16>,
    %c0_28 = arith.constant 0 : index
    %c0_29 = arith.constant 0 : index
    %78 = vector.load %arg8[%c0_28, %c0_29] : memref<16x32xbf16, #tpu.memory_space<vmem>>, vector<16x32xbf16>
    %c0_30 = arith.constant 0 : index
    %c0_31 = arith.constant 0 : index
    %79 = vector.load %arg5[%c0_30, %c0_31] : memref<32x32xbf16, #tpu.memory_space<vmem>>, vector<32x32xbf16>
    %cst_32 = arith.constant dense<0.000000e+00> : vector<16x32xf32>
    %80 = tpu.matmul %78, %79, %cst_32 {dimension_numbers = #tpu.dot_dimension_numbers<[1], [0], [0], [1], [0, 0, 1, 1], [], []>} : vector<16x32xbf16>, vector<32x32xbf16>, vector<16x32xf32> -> vector<16x32xf32>
    %c0_33 = arith.constant 0 : index
    %c0_34 = arith.constant 0 : index
    %81 = vector.load %arg6[%c0_33, %c0_34] : memref<1x32xbf16, #tpu.memory_space<vmem>>, vector<1x32xbf16>
    %82 = arith.extf %81 : vector<1x32xbf16> to vector<1x32xf32>
    %83 = vector.broadcast %82 : vector<1x32xf32> to vector<16x32xf32>
    %84 = arith.addf %80, %83 : vector<16x32xf32>
    %c0_35 = arith.constant 0 : index
    %c0_36 = arith.constant 0 : index
    %c0_37 = arith.constant 0 : index
    %85 = vector.load %arg7[%c0_35, %c0_36, %c0_37] : memref<1x16x32xf32, #tpu.memory_space<vmem>>, vector<1x16x32xf32>
    %86 = vector.shape_cast %85 : vector<1x16x32xf32> to vector<16x32xf32>
    %87 = vector.shape_cast %84 : vector<16x32xf32> to vector<1x16x32xf32>
    tpu.vector_store %arg7[%c0_35, %c0_36, %c0_37], %87 {strides = array<i32>} : memref<1x16x32xf32, #tpu.memory_space<vmem>>, vector<1x16x32xf32>,
    return
  }
  func.func @transform_0(%arg0: i32, %arg1: i32) -> (i32, i32, i32) {
    %c0_i32 = arith.constant 0 : i32
    %c0_i32_0 = arith.constant 0 : i32
    return %arg0, %arg1, %c0_i32 : i32, i32, i32
  }
  func.func @transform_1(%arg0: i32, %arg1: i32) -> (i32, i32, i32) {
    %c0_i32 = arith.constant 0 : i32
    %c0_i32_0 = arith.constant 0 : i32
    %c0_i32_1 = arith.constant 0 : i32
    return %arg0, %c0_i32, %c0_i32_0 : i32, i32, i32
  }
  func.func @transform_2(%arg0: i32, %arg1: i32) -> (i32, i32, i32) {
    %c0_i32 = arith.constant 0 : i32
    %c0_i32_0 = arith.constant 0 : i32
    %c0_i32_1 = arith.constant 0 : i32
    return %arg0, %c0_i32, %c0_i32_0 : i32, i32, i32
  }
  func.func @transform_3(%arg0: i32, %arg1: i32) -> (i32, i32) {
    %c0_i32 = arith.constant 0 : i32
    %c0_i32_0 = arith.constant 0 : i32
    %c0_i32_1 = arith.constant 0 : i32
    return %c0_i32, %c0_i32_0 : i32, i32
  }
  func.func @transform_4(%arg0: i32, %arg1: i32) -> (i32, i32) {
    %c0_i32 = arith.constant 0 : i32
    %c0_i32_0 = arith.constant 0 : i32
    %c0_i32_1 = arith.constant 0 : i32
    return %c0_i32, %c0_i32_0 : i32, i32
  }
  func.func @transform_5(%arg0: i32, %arg1: i32) -> (i32, i32, i32) {
    %c0_i32 = arith.constant 0 : i32
    %c0_i32_0 = arith.constant 0 : i32
    return %arg0, %arg1, %c0_i32 : i32, i32, i32
  }
}

</mosaic_0001>

<bundles_post_ra>
// kernel: attention_forward.2
= control target key start
LH: loop header
LB: loop body
LE: loop exit
PB: predicated region body
PF: predicated region fallthrough
CT: control target
= control target key end

     0   :  { %vm43_vm0 = vcmask 261120   ;;  %vm77_vm1 = vcmask 257024   ;;  %s151_s6 = smov 64   ;;  %s251_s1 = inlined_call_operand.vmem [shape: bf16[32,96], index: 1, kind: input, shape index: {}]   ;;  %s252_s0 = inlined_call_operand.vmem [shape: f32[32,32], index: 0, kind: input, shape index: {}]   ;;  %s253_s2 = inlined_call_operand.vmem [shape: bf16[1,96], index: 2, kind: input, shape index: {}]   ;;  %s254_s3 = inlined_call_operand.vmem [shape: bf16[32,32], index: 3, kind: output, shape index: {0}]   ;;  %s255_s5 = inlined_call_operand.vmem [shape: bf16[32,32], index: 5, kind: output, shape index: {2}]   ;;  %s256_s4 = inlined_call_operand.vmem [shape: bf16[32,32], index: 4, kind: output, shape index: {1}]  }
   0x1   :  { %v145_v0 = vld [vmem:[%s251_s1 + $0x8] sm:$0xff]  ;;  %v144_v1 = vld [vmem:[%s251_s1] sm:$0xff]  ;;  %v20_v4 = vld [vmem:[%s252_s0 + $0x10] sm:$0xff] }
   0x2   :  { %v18_v2 = vld [vmem:[%s252_s0] sm:$0xff]  ;;  %56 = vmatpush.bf16.msra.mxu0 %v145_v0  ;;  %146 = vmatpush.bf16.msra.mxu1 %v145_v0  ;;  %v19_v3 = vld [vmem:[%s252_s0 + $0x8] sm:$0xff]  ;;  %v21_v5 = vld [vmem:[%s252_s0 + $0x18] sm:$0xff]  ;;  %s150_s0 = smov 96  }
   0x3   :  { %v22_v6 = vpack.c.bf16 %v19_v3, %v18_v2  ;;  %v23_v7 = vpack.c.bf16 %v21_v5, %v20_v4  ;;  %v28_v8 = vld [vmem:[%s253_s2] sm:$0x1] }
   0x4   :  { %v29_v9 = vunpack.c.l.bf16 %v28_v8 }
   0x6   :  { %57 = vmatpush.bf16.msra.mxu0 %v144_v1  ;;  %147 = vmatpush.bf16.msra.mxu1 %v144_v1  ;;  %v30_v10 = vperm.slane %v29_v9, 0 }
   0x9   :  { %142 = vmatmul.msk.bf16.vlgmr.msra.gmra.mxu0 %vm43_vm0, %v22_v6  ;;  %143 = vmatmul.msk.bf16.vlgmr.msra.gmra.mxu1 %vm43_vm0, %v23_v7 }
  0x86   :  { %v59_v11 = vpop.f32.mrf.mxu0  ;;  %v64_v12 = vpop.f32.mrf.mxu1 }
  0x87   :  { %v60_v13 = vadd.f32 %v59_v11, %v30_v10  ;;  %v65_v14 = vadd.f32 %v64_v12, %v30_v10 }
  0x89   :  { %v69_v15 = vmul.f32 0.35355338, %v60_v13  ;;  %v71_v16 = vmul.f32 0.35355338, %v65_v14  ;;  %v84_v17 = vpack.c.bf16 %v65_v14, %v65_v14  ;;  %v82_v18 = vpack.c.bf16 %v60_v13, %v60_v13 }
  0x8b   :  { %v73_v19 = vpack.c.bf16 %v69_v15, %v69_v15  ;;  %v75_v20 = vpack.c.bf16 %v71_v16, %v71_v16  ;;  %94 = vrot.lane.b32.xlu1 %v84_v17, %s150_s0  ;;  %106 = vrot.lane.b32.xlu2 %v82_v18, %s151_s6 }
  0x8c   :  { %90 = vrot.lane.b32.xlu0 %v82_v18, %s150_s0 }
  0x8d   :  { %78 = vst.msk [vmem:[%s254_s3] sm:$0xf] %vm77_vm1, %v73_v19 }
  0x8e   :  { %80 = vst.msk [vmem:[%s254_s3 + $0x8] sm:$0xf] %vm77_vm1, %v75_v20  ;;  %v61_v21 = vpop.f32.mrf.mxu0  ;;  %v66_v22 = vpop.f32.mrf.mxu1 }
  0x8f   :  { %v62_v23 = vadd.f32 %v61_v21, %v30_v10  ;;  %v67_v24 = vadd.f32 %v66_v22, %v30_v10 }
  0x91   :  { %v70_v25 = vmul.f32 0.35355338, %v62_v23  ;;  %v83_v26 = vpack.c.bf16 %v62_v23, %v62_v23  ;;  %v72_v27 = vmul.f32 0.35355338, %v67_v24  ;;  %v85_v28 = vpack.c.bf16 %v67_v24, %v67_v24 }
  0x93   :  { %v74_v29 = vpack.c.bf16 %v70_v25, %v70_v25  ;;  %v76_v30 = vpack.c.bf16 %v72_v27, %v72_v27  ;;  %96 = vrot.lane.b32.xlu1 %v85_v28, %s150_s0  ;;  %108 = vrot.lane.b32.xlu2 %v83_v26, %s151_s6 }
  0x94   :  { %92 = vrot.lane.b32.xlu0 %v83_v26, %s150_s0 }
  0x95   :  { %79 = vst.msk [vmem:[%s254_s3 + $0x4] sm:$0xf] %vm77_vm1, %v74_v29 }
  0x96   :  { %81 = vst.msk [vmem:[%s254_s3 + $0xc] sm:$0xf] %vm77_vm1, %v76_v30 }
  0x9b   :  { %112 = vrot.lane.b32.xlu1 %v85_v28, %s151_s6 }
  0x9c   :  { %110 = vrot.lane.b32.xlu0 %v84_v17, %s151_s6 }
  0xe5   :  { %v107_v31 = vpop.permute.xlu2 %106 }
  0xe6   :  { %118 = vst.msk [vmem:[%s255_s5] sm:$0xf] %vm77_vm1, %v107_v31 }
  0xed   :  { %v109_v32 = vpop.permute.xlu2 %108 }
  0xee   :  { %119 = vst.msk [vmem:[%s255_s5 + $0x4] sm:$0xf] %vm77_vm1, %v109_v32 }
  0xfd   :  { %v95_v33 = vpop.permute.xlu1 %94 }
  0xfe   :  { %104 = vst.msk [vmem:[%s256_s4 + $0x8] sm:$0xf] %vm77_vm1, %v95_v33  ;;  %v91_v34 = vpop.permute.xlu0 %90 }
  0xff   :  { %102 = vst.msk [vmem:[%s256_s4] sm:$0xf] %vm77_vm1, %v91_v34 }
 0x105   :  { %v97_v35 = vpop.permute.xlu1 %96 }
 0x106   :  { %105 = vst.msk [vmem:[%s256_s4 + $0xc] sm:$0xf] %vm77_vm1, %v97_v35  ;;  %v93_v36 = vpop.permute.xlu0 %92 }
 0x107   :  { %103 = vst.msk [vmem:[%s256_s4 + $0x4] sm:$0xf] %vm77_vm1, %v93_v36 }
 0x10d   :  { %v113_v37 = vpop.permute.xlu1 %112 }
 0x10e   :  { %121 = vst.msk [vmem:[%s255_s5 + $0xc] sm:$0xf] %vm77_vm1, %v113_v37  ;;  %v111_v38 = vpop.permute.xlu0 %110 }
 0x10f   :  { %120 = vst.msk [vmem:[%s255_s5 + $0x8] sm:$0xf] %vm77_vm1, %v111_v38 }

// kernel: attention_forward.3
= control target key start
LH: loop header
LB: loop body
LE: loop exit
PB: predicated region body
PF: predicated region fallthrough
CT: control target
= control target key end

     0   :  { %10 = vsyncpa [#allocation4], 0  ;;  %s1232_s0 = inlined_call_operand.vmem [shape: bf16[2,16,32], index: 0, kind: input, shape index: {}]   ;;  %s1233_s1 = inlined_call_operand.vmem [shape: bf16[2,16,32], index: 1, kind: input, shape index: {}]   ;;  %s1234_s2 = inlined_call_operand.vmem [shape: bf16[2,16,32], index: 2, kind: input, shape index: {}]   ;;  %s1235_s3 = inlined_call_operand.vmem [shape: bf16[32,32], index: 3, kind: input, shape index: {}]   ;;  %s1236_s4 = inlined_call_operand.vmem [shape: bf16[1,32], index: 4, kind: input, shape index: {}]   ;;  %s1237_s5 = inlined_call_operand.hbm [shape: f32[2,16,32], index: 5, kind: output, shape index: {}]  }
   0x1   :  { %12 = vsyncpa [#allocation4 + $0x1], 0  ;;  %s1062_s18 = smov 0   ;;  %s1064_s19 = smov 0  }
   0x2   :  { %s1066_s20 = smov 0   ;;  %s1068_s21 = smov 0  }
   0x3   :  { %s1070_s22 = smov 0   ;;  %s1072_s23 = smov 0  }
   0x4 LB: > { %s791_s24 = sadd.s32 4294967295, %s1023_s23   ;;  %s792_s25 = sadd.s32 4294967294, %s1023_s23   ;;  %s1023_s23 = sphi %s1072_s23, %s18_s23   ;;  %s1019_s22 = sphi %s1070_s22, %s1244_s22   ;;  %s1015_s21 = sphi %s1068_s21, %s1243_s21   ;;  %s1011_s20 = sphi %s1066_s20, %s1242_s20   ;;  %s1007_s19 = sphi %s1064_s19, %s1241_s19   ;;  %s1003_s18 = sphi %s1062_s18, %s1240_s18  }
   0x5   : > { %s30_s26 = sadd.s32 1, %s1019_s22  ;;  %s161_s27 = sadd.s32 1, %s1011_s20 }
   0x6   : > { %p32_p0 = scmp.ge.s32.totalorder %s30_s26, 2  ;;  %p171_p1 = scmp.ne.s32.totalorder %s1011_s20, %s1007_s19 }
   0x7   : > { %p172_p2 = scmp.eq.s32.totalorder %s791_s24, 1  ;;  %p177_p3 = scmp.ne.s32.totalorder %s1007_s19, %s1003_s18 }
   0x8   : > { %s1246_s26 = smov (%p32_p0, %s30_s26), 0  ;;  %p178_p5 = scmp.eq.s32.totalorder %s792_s25, 1 }
   0x9   : > { %p1102_p4 = por %p172_p2, %p171_p1  ;;  %s156_s29 = ssub.s32 %s1019_s22, %s1246_s26 }
   0xa   : > { %p795_p6 = scmp.ge.s32.totalorder %s1023_s23, 1  ;;  %p159_p7 = scmp.eq.s32.totalorder %s156_s29, 0 }
   0xb   : > { %p1109_p8 = por %p178_p5, %p177_p3  ;;  %p231_p9 = scmp.lt.s32.totalorder %s1023_s23, 3 }
   0xc   : > { %s1115_s6 = scalar_select %p159_p7, %s1011_s20, %s161_s27  }
   0xd   : > { %p232_p10 = pnand %p795_p6, %p231_p9 }
   0xe   : > { %p274_p11 = scmp.lt.s32.totalorder (!%p232_p10), %s1015_s21, 1  ;;  %s1025_s15 = smov (!%p232_p10), 120  }
   0xf   : > { %235 = sbr.rel (%p232_p10) target bundleno = 1243 (0x4db), region = 40  ;;  %s1026_s16 = smov (!%p232_p10), 104  }
  0x10   : > { %s1027_s17 = smov (!%p232_p10), 112   ;;  %s1028_s29 = smov (!%p232_p10), 8  }
  0x14   : > { %s275_s7 = scalar_select %p274_p11, %s1015_s21, 1  ;;  %vm311_vm0 = vcmask 64512   ;;  %vm332_vm1 = vcmask 130048   ;;  %vm381_vm2 = vcmask 60416   ;;  %vm461_vm3 = vcmask 126016  }
  0x15   : > { %vm541_vm4 = vcmask 191616   ;;  %vm621_vm5 = vcmask 257216   ;;  %vm650_vm6 = vcmask 261120  }
  0x16   : > { %s1119_s8 = sshll.u32 %s275_s7, 3  ;;  %s1029_s7 = smov 16  }
  0x17   : > { %s287_s11 = scalar_lea.vmem %s1233_s1, %s1119_s8  ;;  %s281_s14 = scalar_lea.vmem %s1232_s0, %s1119_s8 }
  0x18   : > { %v845_v0 = vld [vmem:[%s287_s11] sm:$0xff]  ;;  %s292_s27 = scalar_lea.vmem %s1234_s2, %s1119_s8  ;;  %s1030_s8 = smov 24  }
  0x19   : > { %v844_v1 = vld [vmem:[%s281_s14] sm:$0xff]  ;;  %v316_v2 = vsel %vm311_vm0, %v845_v0, 0  ;;  %386 = vrot.lane.b32.xlu1 %v845_v0, %s1025_s15  ;;  %s965_s14 = scalar_lea.hbm %s1237_s5, 32 }
  0x1a   : > { %384 = vrot.lane.b32.xlu2 %v844_v1, %s1025_s15  ;;  %325 = vmatpush.bf16.xpose.msra.mxu0 %v316_v2  ;;  %v1150_v26 = vld [vmem:[%s292_s27] sm:$0xff] }
  0x1b   : > { %372 = vmatpush.bf16.msra.mxu1 %v1150_v26 }
  0x21   : > { %811 = vmatmul.msk.bf16.vlgmr.msra.gmra.mxu0 %vm311_vm0, %v844_v1 }
  0x22   : > { %546 = vrot.lane.b32.xlu2 %v845_v0, %s1026_s16 }
  0x74   : > { %v385_v5 = vpop.permute.xlu2 %384 }
  0x7c   : > { %v547_v18 = vpop.permute.xlu2 %546 }
  0x7d   : > { %v552_v20 = vsel %vm311_vm0, %v547_v18, 0 }
  0x7e   : > { %561 = vmatpush.bf16.xpose.msrb.mxu0 %v552_v20 }
  0x8b   : > { %v387_v3 = vpop.permute.xlu1 %386 }
  0x8c   : > { %v392_v4 = vsel %vm311_vm0, %v387_v3, 0 }
  0x8d   : > { %401 = vmatpush.bf16.xpose.msra.mxu2 %v392_v4 }
  0x94   : > { %817 = vmatmul.msk.bf16.vlgmr.msra.gmra.mxu2 %vm311_vm0, %v385_v5 }
  0x9e   : > { %v327_v6 = vpop.f32.mrf.mxu0 }
  0x9f   : > { %v333_v7 = vsel %vm332_vm1, %v327_v6, -inf }
  0xa0   : > { %334 = vmax.xlane.f32.xlu0 %v333_v7 }
  0xa6   : > { %v329_v8 = vpop.f32.mrf.mxu0 }
  0xa7   : > { %v336_v9 = vsel %vm332_vm1, %v329_v8, -inf }
  0xa8   : > { %337 = vmax.xlane.f32.xlu0 %v336_v9 }
  0xbc   : > { %466 = vrot.lane.b32.xlu0 %v845_v0, %s1027_s17 }
  0xc4   : > { %464 = vrot.lane.b32.xlu0 %v844_v1, %s1027_s17 }
 0x113   : > { %v335_v10 = vpop.xlane.xlu0 %334 }
 0x114   : > { %v339_v11 = vsub.f32 %v327_v6, %v335_v10 }
 0x116   : > { %v341_v12 = vmul.f32 1.442695, %v339_v11 }
 0x117   : > { %v403_v19 = vpop.f32.mrf.mxu2 }
 0x118   : > { %913 = vpow2.f32 %v341_v12  ;;  %v408_v21 = vsel %vm332_vm1, %v403_v19, -inf }
 0x119   : > { %409 = vmax.xlane.f32.xlu0 %v408_v21 }
 0x11b   : > { %v338_v13 = vpop.xlane.xlu0 %337 }
 0x11c   : > { %v340_v14 = vsub.f32 %v329_v8, %v338_v13 }
 0x11e   : > { %v914_v15 = vpop.eup %913  ;;  %v343_v16 = vmul.f32 1.442695, %v340_v14 }
 0x11f   : > { %v345_v17 = vsel %vm332_vm1, %v914_v15, 0.0  ;;  %v405_v24 = vpop.f32.mrf.mxu2 }
 0x120   : > { %915 = vpow2.f32 %v343_v16  ;;  %346 = vadd.xlane.f32.xlu1 %v345_v17  ;;  %v411_v25 = vsel %vm332_vm1, %v405_v24, -inf }
 0x126   : > { %v916_v22 = vpop.eup %915 }
 0x127   : > { %v348_v23 = vsel %vm332_vm1, %v916_v22, 0.0 }
 0x128   : > { %349 = vadd.xlane.f32.xlu2 %v348_v23 }
 0x12e   : > { %v467_v27 = vpop.permute.xlu0 %466 }
 0x12f   : > { %v472_v28 = vsel %vm311_vm0, %v467_v27, 0 }
 0x130   : > { %481 = vmatpush.bf16.xpose.msrb.mxu1 %v472_v28 }
 0x136   : > { %v465_v37 = vpop.permute.xlu0 %464 }
 0x140   : > { %544 = vrot.lane.b32.xlu2 %v844_v1, %s1026_s16 }
 0x169   : > { %412 = vmax.xlane.f32.xlu2 %v411_v25 }
 0x181   : > { %431 = vrot.lane.b32.xlu2 %v1150_v26, %s1025_s15  ;;  %s270_s15 = sand.u32 1, %s1007_s19  }
 0x182   : > { %s671_s10 = scalar_lea.sflag [#allocation4], %s270_s15 }
 0x18c   : > { %v410_v51 = vpop.xlane.xlu0 %409 }
 0x18d   : > { %v414_v52 = vsub.f32 %v403_v19, %v410_v51 }
 0x18f   : > { %v416_v55 = vmul.f32 1.442695, %v414_v52 }
 0x193   : > { %v347_v29 = vpop.xlane.xlu1 %346 }
 0x194   : > { %917 = vrcp.f32 %v347_v29 }
 0x19a   : > { %v918_v31 = vpop.eup %917 }
 0x19b   : > { %v350_v30 = vpop.xlane.xlu2 %349  ;;  %v353_v34 = vmul.f32 %v918_v31, %v914_v15 }
 0x19c   : > { %919 = vrcp.f32 %v350_v30 }
 0x1a2   : > { %v920_v32 = vpop.eup %919 }
 0x1a3   : > { %v545_v33 = vpop.permute.xlu2 %544  ;;  %v354_v35 = vmul.f32 %v920_v32, %v916_v22 }
 0x1a4   : > { %821 = vmatmul.msk.bf16.vlgmr.msrb.gmra.mxu0 %vm311_vm0, %v545_v33 }
 0x1a5   : > { %v355_v36 = vpack.c.bf16 %v354_v35, %v353_v34 }
 0x1a7   : > { %816 = vmatmul.msk.bf16.vlgmr.msra.gmra.mxu1 %vm332_vm1, %v355_v36 }
 0x1b7   : > { %819 = vmatmul.msk.bf16.vlgmr.msrb.gmra.mxu1 %vm311_vm0, %v465_v37 }
 0x1dc   : > { %v413_v38 = vpop.xlane.xlu2 %412 }
 0x1dd   : > { %v415_v39 = vsub.f32 %v405_v24, %v413_v38 }
 0x1df   : > { %v418_v40 = vmul.f32 1.442695, %v415_v39 }
 0x1e1   : > { %921 = vpow2.f32 %v418_v40 }
 0x1e2   : > { %923 = vpow2.f32 %v416_v55  ;;  %v849_v55 = vld [vmem:[%s1235_s3 + $0x8] sm:$0xff] }
 0x1e3   : > { %660 = vmatpush.bf16.msra.mxu1 %v849_v55 }
 0x1e4   : > { %v432_v0 = vpop.permute.xlu2 %431 }
 0x1e5   : > { %444 = vmatpush.bf16.msra.mxu3 %v432_v0 }
 0x1e7   : > { %v1159_v41 = vpop.eup %921 }
 0x1e8   : > { %v423_v42 = vsel %vm332_vm1, %v1159_v41, 0.0  ;;  %v924_v58 = vpop.eup %923 }
 0x1e9   : > { %424 = vadd.xlane.f32.xlu0 %v423_v42  ;;  %v420_v59 = vsel %vm332_vm1, %v924_v58, 0.0 }
 0x221   : > { %v563_v43 = vpop.f32.mrf.mxu0 }
 0x222   : > { %v568_v44 = vsel %vm332_vm1, %v563_v43, -inf }
 0x223   : > { %569 = vmax.xlane.f32.xlu1 %v568_v44 }
 0x224   : > { %v374_v45 = vpop.f32.mrf.mxu1 }
 0x225   : > { %v379_v46 = vpack.c.bf16 %v374_v45, %v374_v45 }
 0x227   : > { %382 = vst.msk [vmem:[#allocation2] sm:$0xf] %vm381_vm2, %v379_v46 }
 0x229   : > { %v565_v47 = vpop.f32.mrf.mxu0 }
 0x22a   : > { %v571_v48 = vsel %vm332_vm1, %v565_v47, -inf }
 0x22b   : > { %572 = vmax.xlane.f32.xlu1 %v571_v48 }
 0x22c   : > { %v376_v49 = vpop.f32.mrf.mxu1 }
 0x22d   : > { %v380_v50 = vpack.c.bf16 %v376_v49, %v376_v49 }
 0x22f   : > { %383 = vst.msk [vmem:[#allocation2 + $0x4] sm:$0xf] %vm381_vm2, %v380_v50 }
 0x234   : > { %v483_v53 = vpop.f32.mrf.mxu1 }
 0x235   : > { %v488_v54 = vsel %vm332_vm1, %v483_v53, -inf }
 0x236   : > { %489 = vmax.xlane.f32.xlu1 %v488_v54 }
 0x23c   : > { %v485_v56 = vpop.f32.mrf.mxu1 }
 0x23d   : > { %v491_v57 = vsel %vm332_vm1, %v485_v56, -inf }
 0x23e   : > { %492 = vmax.xlane.f32.xlu1 %v491_v57 }
 0x246   : > { %421 = vadd.xlane.f32.xlu1 %v420_v59 }
 0x25c   : > { %v425_v14 = vpop.xlane.xlu0 %424 }
 0x296   : > { %v570_v60 = vpop.xlane.xlu1 %569 }
 0x297   : > { %v574_v61 = vsub.f32 %v563_v43, %v570_v60 }
 0x299   : > { %v576_v62 = vmul.f32 1.442695, %v574_v61  ;;  %v630_v61 = vld [vmem:[%s1236_s4] sm:$0x1] }
 0x29b   : > { %925 = vpow2.f32 %v576_v62  ;;  %v631_v62 = vunpack.c.l.bf16 %v630_v61 }
 0x29e   : > { %v573_v63 = vpop.xlane.xlu1 %572 }
 0x29f   : > { %v575_v1 = vsub.f32 %v565_v47, %v573_v63  ;;  %v632_v63 = vperm.slane %v631_v62, 0 }
 0x2a1   : > { %v926_v2 = vpop.eup %925  ;;  %v578_v3 = vmul.f32 1.442695, %v575_v1 }
 0x2a2   : > { %v580_v4 = vsel %vm332_vm1, %v926_v2, 0.0 }
 0x2a3   : > { %927 = vpow2.f32 %v578_v3  ;;  %581 = vadd.xlane.f32.xlu1 %v580_v4 }
 0x2a9   : > { %v928_v5 = vpop.eup %927  ;;  %v490_v6 = vpop.xlane.xlu1 %489 }
 0x2aa   : > { %v494_v7 = vsub.f32 %v483_v53, %v490_v6  ;;  %v583_v8 = vsel %vm332_vm1, %v928_v5, 0.0 }
 0x2ab   : > { %584 = vadd.xlane.f32.xlu0 %v583_v8 }
 0x2ac   : > { %v496_v9 = vmul.f32 1.442695, %v494_v7 }
 0x2ae   : > { %929 = vpow2.f32 %v496_v9 }
 0x2b1   : > { %v493_v10 = vpop.xlane.xlu1 %492 }
 0x2b2   : > { %v495_v11 = vsub.f32 %v485_v56, %v493_v10  ;;  %v848_v56 = vld [vmem:[%s1235_s3] sm:$0xff] }
 0x2b3   : > { %661 = vmatpush.bf16.msra.mxu1 %v848_v56 }
 0x2b4   : > { %v930_v12 = vpop.eup %929  ;;  %v498_v13 = vmul.f32 1.442695, %v495_v11 }
 0x2b5   : > { %v500_v15 = vsel %vm332_vm1, %v930_v12, 0.0 }
 0x2b6   : > { %931 = vpow2.f32 %v498_v13  ;;  %501 = vadd.xlane.f32.xlu1 %v500_v15 }
 0x2b7   : > { %933 = vrcp.f32 %v425_v14 }
 0x2b9   : > { %v422_v16 = vpop.xlane.xlu1 %421 }
 0x2ba   : > { %935 = vrcp.f32 %v422_v16 }
 0x2bc   : > { %v932_v17 = vpop.eup %931 }
 0x2bd   : > { %v503_v18 = vsel %vm332_vm1, %v932_v17, 0.0  ;;  %v934_v19 = vpop.eup %933 }
 0x2be   : > { %504 = vadd.xlane.f32.xlu0 %v503_v18  ;;  %v429_v22 = vmul.f32 %v934_v19, %v1159_v41 }
 0x2c0   : > { %v936_v20 = vpop.eup %935 }
 0x2c1   : > { %v428_v21 = vmul.f32 %v936_v20, %v924_v58 }
 0x2c3   : > { %v430_v23 = vpack.c.bf16 %v429_v22, %v428_v21 }
 0x2c5   : > { %818 = vmatmul.msk.bf16.vlgmr.msra.gmra.mxu3 %vm332_vm1, %v430_v23 }
 0x2cf   : > { %511 = vrot.lane.b32.xlu1 %v1150_v26, %s1027_s17  ;;  %s850_s17 = sshll.u32 %s1015_s21, 4 }
 0x2d2   : > { %591 = vrot.lane.b32.xlu0 %v1150_v26, %s1026_s16  ;;  %s796_s16 = sshll.u32 %s270_s15, 4 }
 0x2d3   : > { %s272_s24 = scalar_lea.vmem [#allocation3], %s796_s16 }
 0x316   : > { %v582_v25 = vpop.xlane.xlu1 %581 }
 0x31e   : > { %v585_v24 = vpop.xlane.xlu0 %584 }
 0x329   : > { %v502_v28 = vpop.xlane.xlu1 %501 }
 0x331   : > { %v505_v27 = vpop.xlane.xlu0 %504 }
 0x332   : > { %937 = vrcp.f32 %v505_v27 }
 0x333   : > { %939 = vrcp.f32 %v502_v28 }
 0x334   : > { %941 = vrcp.f32 %v585_v24 }
 0x335   : > { %943 = vrcp.f32 %v582_v25 }
 0x338   : > { %v938_v29 = vpop.eup %937 }
 0x339   : > { %v940_v30 = vpop.eup %939  ;;  %v509_v32 = vmul.f32 %v938_v29, %v932_v17 }
 0x33a   : > { %v942_v31 = vpop.eup %941  ;;  %v508_v34 = vmul.f32 %v940_v30, %v930_v12 }
 0x33b   : > { %v944_v33 = vpop.eup %943  ;;  %v589_v36 = vmul.f32 %v942_v31, %v928_v5 }
 0x33c   : > { %v510_v37 = vpack.c.bf16 %v509_v32, %v508_v34  ;;  %v588_v38 = vmul.f32 %v944_v33, %v926_v2 }
 0x33e   : > { %v590_v39 = vpack.c.bf16 %v589_v36, %v588_v38 }
 0x341   : > { %v512_v35 = vpop.permute.xlu1 %511 }
 0x342   : > { %524 = vmatpush.bf16.msrb.mxu3 %v512_v35 }
 0x344   : > { %v592_v26 = vpop.permute.xlu0 %591 }
 0x345   : > { %820 = vmatmul.msk.bf16.vlgmr.msrb.gmra.mxu3 %vm332_vm1, %v510_v37  ;;  %604 = vmatpush.bf16.msrb.mxu2 %v592_v26 }
 0x348   : > { %v446_v40 = vpop.f32.mrf.mxu3  ;;  %822 = vmatmul.msk.bf16.vlgmr.msrb.gmra.mxu2 %vm332_vm1, %v590_v39 }
 0x349   : > { %v451_v41 = vpack.c.bf16 %v446_v40, %v446_v40 }
 0x34b   : > { %455 = vrot.lane.b32.xlu2 %v451_v41, %s1028_s29 }
 0x350   : > { %v448_v42 = vpop.f32.mrf.mxu3 }
 0x351   : > { %v452_v43 = vpack.c.bf16 %v448_v42, %v448_v42 }
 0x353   : > { %457 = vrot.lane.b32.xlu2 %v452_v43, %s1028_s29 }
 0x3a5   : > { %v456_v44 = vpop.permute.xlu2 %455 }
 0x3a6   : > { %462 = vst.msk [vmem:[#allocation2] sm:$0xf] %vm461_vm3, %v456_v44 }
 0x3ad   : > { %v458_v45 = vpop.permute.xlu2 %457 }
 0x3ae   : > { %463 = vst.msk [vmem:[#allocation2 + $0x4] sm:$0xf] %vm461_vm3, %v458_v45 }
 0x3c8   : > { %v526_v46 = vpop.f32.mrf.mxu3 }
 0x3c9   : > { %v531_v47 = vpack.c.bf16 %v526_v46, %v526_v46 }
 0x3cb   : > { %535 = vrot.lane.b32.xlu2 %v531_v47, %s1029_s7  ;;  %v606_v48 = vpop.f32.mrf.mxu2 }
 0x3cc   : > { %v611_v49 = vpack.c.bf16 %v606_v48, %v606_v48 }
 0x3ce   : > { %615 = vrot.lane.b32.xlu1 %v611_v49, %s1030_s8 }
 0x3d0   : > { %v528_v50 = vpop.f32.mrf.mxu3 }
 0x3d1   : > { %v532_v51 = vpack.c.bf16 %v528_v50, %v528_v50 }
 0x3d3   : > { %537 = vrot.lane.b32.xlu0 %v532_v51, %s1029_s7  ;;  %v608_v52 = vpop.f32.mrf.mxu2  ;;  %s684_s7 = scalar_lea.hbm %s1237_s5, %s850_s17 }
 0x3d4   : > { %v612_v53 = vpack.c.bf16 %v608_v52, %v608_v52  ;;  %s687_s9 = sshll.u32 %s684_s7, 4  ;;  %s688_s9 = int_to_ptr.hbm [resolvable:$true] %s687_s9 }
 0x3d5   : > { %s959_s11 = sshra.s32 %s688_s9, 4  ;;  %s960_s11 = int_to_ptr.hbm [resolvable:$true] %s959_s11 }
 0x3d6   : > { %617 = vrot.lane.b32.xlu2 %v612_v53, %s1030_s8  ;;  %s685_s8 = sshll.u32 %s272_s24, 4  ;;  %s961_s21 = scalar_lea.hbm %s960_s11, 16  ;;  %s686_s8 = int_to_ptr.vmem [resolvable:$true] %s685_s8 }
 0x3d7   : > { %p962_p12 = scmp.ne.s32.totalorder %s960_s11, %s961_s21  ;;  %p966_p1 = scmp.lt.s32.totalorder %s960_s11, %s1237_s5 }
 0x3d8   : > { %p967_p2 = scmp.lt.s32.totalorder %s965_s14, %s961_s21 }
 0x3d9   : > { %p963_p13 = pnand %p962_p12, %p1102_p4 }
 0x3da   : > { %p968_p3 = por %p967_p2, %p966_p1 }
 0x3db   : > { %p964_p0 = pneg %p963_p13 }
 0x3dd   : > { %p969_p5 = pnand %p968_p3, %p964_p0 }
 0x425   : > { %v536_v54 = vpop.permute.xlu2 %535 }
 0x426   : > { %542 = vst.msk [vmem:[#allocation2] sm:$0xf] %vm541_vm4, %v536_v54 }
 0x430   : > { %v618_v59 = vpop.permute.xlu2 %617 }
 0x440   : > { %v616_v57 = vpop.permute.xlu1 %615 }
 0x441   : > { %622 = vst.msk [vmem:[#allocation2] sm:$0xf] %vm621_vm5, %v616_v57 }
 0x445   : > { %v538_v58 = vpop.permute.xlu0 %537 }
 0x446   : > { %543 = vst.msk [vmem:[#allocation2 + $0x4] sm:$0xf] %vm541_vm4, %v538_v58 }
 0x447   : > { %623 = vst.msk [vmem:[#allocation2 + $0x4] sm:$0xf] %vm621_vm5, %v618_v59 }
 0x44e   : > { %v847_v60 = vld [vmem:[#allocation2] sm:$0xff] }
 0x44f   : > { %835 = vmatmul.msk.bf16.vlgmr.msra.gmra.mxu1 %vm650_vm6, %v847_v60 }
 0x4cc   : > { %v663_v0 = vpop.f32.mrf.mxu1 }
 0x4cd   : > { %v664_v1 = vadd.f32 %v663_v0, %v632_v63 }
 0x4cf   : > { %668 = vst.msk [vmem:[%s272_s24] sm:$0xff] %vm650_vm6, %v664_v1 }
 0x4d4   : > { %v665_v2 = vpop.f32.mrf.mxu1 }
 0x4d5   : > { %v666_v3 = vadd.f32 %v665_v2, %v632_v63 }
 0x4d7   : > { %669 = vst.msk [vmem:[%s272_s24 + $0x8] sm:$0xff] %vm650_vm6, %v666_v3 }
 0x4d8   : > { %972 = shalt.err (!%p969_p5)
}
 0x4d9   : > { %s1031_s15 = smov 128  }
 0x4da   : > { %851 = dma.vmem_to_hbm [thread:$0]  (%p1102_p4), %s686_s8, 256, %s688_s9, %s671_s10, %s1031_s15, %s1031_s15, %s1028_s29  }
 0x4db PF: > { %p857_p6 = scmp.ge.s32.totalorder %s1023_s23, 2  ;;  %s702_s24 = sand.u32 1, %s1003_s18  }
 0x4dc   : > { %s703_s25 = scalar_lea.sflag [#allocation4], %s702_s24 }
 0x4dd   : > { %p854_p7 = pnand %p857_p6, %p1109_p8 }
 0x4df   : > { %p855_p9 = pneg %p854_p7 }
 0x4e1   : > { %998 = dma.done.wait (%p855_p9), %s703_s25, 256  }
 0x4e2   : > { %1000 = vsyncadd (%p855_p9), %s703_s25, 4294967040  ;;  %s18_s23 = sadd.s32 1, %s1023_s23   ;;  %s1240_s18 = smov %s1007_s19 }
 0x4e3   : > { %p15_p10 = scmp.ge.s32.totalorder %s18_s23, 4   ;;  %s1241_s19 = smov %s1011_s20 }
 0x4e4   : > { %s1242_s20 = smov %s1115_s6  ;;  %s1243_s21 = smov %s1019_s22 }
 0x4e5   : > { %s1244_s22 = smov %s1246_s26  ;;  %17 = sbr.rel (!%p15_p10) target bundleno = 4 (0x4), region = 81 }
 0x4ea   :  { %709 = vsyncpa [#allocation4], 1 }
 0x4eb   :  { %711 = vsyncpa [#allocation4 + $0x1], 1 }

</bundles_post_ra>
